<compile_context>
chip_gen: v6e
topology: v6e:2x2x1
jax: 0.10.0
libtpu: 0.0.40
codegen_flags: <defaults>
</compile_context>

<pallas_src>
import jax
import jax.numpy as jnp
from jax.experimental import pallas as pl
from jax.experimental.pallas import tpu as pltpu


_LANE = 128
_SUBLANE = 8
# Conservative per-TensorCore VMEM budget: leaves headroom on v7x (64 MiB physical
# per TC) for compiler-internal scratch; trivially fits v5e/v6e (128 MiB).
_VMEM_BUDGET = 48 << 20


def _round_up(x, m):
    return ((x + m - 1) // m) * m


def _pick_tile(dim_pad, max_tile, align):
    """Largest multiple of `align` that divides dim_pad and is <= max_tile."""
    t = max(min(max_tile, dim_pad), align)
    t = (t // align) * align
    while t > align and dim_pad % t != 0:
        t -= align
    return max(t, align)


# ----------------------------------------------------------------------------------
# Kernels
# ----------------------------------------------------------------------------------
def _linear_single_k_kernel(x_ref, w_ref, b_ref, o_ref):
    # Whole contraction in one K step: no scratch accumulator, no pl.when regions.
    acc = jnp.dot(x_ref[...], w_ref[...], preferred_element_type=jnp.float32)
    o_ref[...] = (acc + b_ref[...]).astype(o_ref.dtype)


def _linear_multi_k_f32out_kernel(x_ref, w_ref, b_ref, o_ref):
    # f32 output: accumulate directly into the resident output block (no VMEM scratch).
    @pl.when(pl.program_id(2) == 0)
    def _init():
        o_ref[...] = jnp.zeros_like(o_ref)

    o_ref[...] += jnp.dot(x_ref[...], w_ref[...], preferred_element_type=jnp.float32)

    @pl.when(pl.program_id(2) == pl.num_programs(2) - 1)
    def _epilogue():
        o_ref[...] += b_ref[...]


def _linear_multi_k_kernel(x_ref, w_ref, b_ref, o_ref, acc_ref):
    # Non-f32 output: resident f32 scratch accumulator, cast once in the epilogue.
    @pl.when(pl.program_id(2) == 0)
    def _init():
        acc_ref[...] = jnp.zeros_like(acc_ref)

    acc_ref[...] += jnp.dot(x_ref[...], w_ref[...], preferred_element_type=jnp.float32)

    @pl.when(pl.program_id(2) == pl.num_programs(2) - 1)
    def _epilogue():
        o_ref[...] = (acc_ref[...] + b_ref[...]).astype(o_ref.dtype)


# ----------------------------------------------------------------------------------
# Parameter preparation (done ONCE, not per forward call)
# ----------------------------------------------------------------------------------
def prepare_dot_scratch_params(weight, bias, *, compute_dtype=jnp.bfloat16):
    """Pad + transpose + cast nn.Linear params once at init time.

    weight: [n_cla, emb_size]  (PyTorch nn.Linear layout)
    bias:   [n_cla]
    Returns (weight_t_padded [E_pad, N_pad] in compute_dtype, bias2d_f32 [1, N_pad]).
    """
    n_cla, emb = weight.shape
    E_pad = _round_up(emb, _LANE)
    N_pad = _round_up(n_cla, _LANE)

    w_t = jnp.asarray(weight).T  # [E, N]
    if (E_pad, N_pad) != (emb, n_cla):
        w_t = jnp.pad(w_t, ((0, E_pad - emb), (0, N_pad - n_cla)))
    if compute_dtype is not None:
        w_t = w_t.astype(compute_dtype)

    b = jnp.asarray(bias)
    if N_pad != n_cla:
        b = jnp.pad(b, (0, N_pad - n_cla))
    bias2d = b.reshape(1, N_pad).astype(jnp.float32)
    return w_t, bias2d


# ----------------------------------------------------------------------------------
# Forward
# ----------------------------------------------------------------------------------
def dot_scratch_forward(f, weight_t_pad, bias2d, n_cla, *, bm=None, bn=None, bk=None,
                        out_dtype=None, weight_buffers=2):
    """logits = f @ W.T + b, with W/b already padded & cast by prepare_dot_scratch_params.

    f:            [B, E]          activations (cast to the weight dtype here)
    weight_t_pad: [E_pad, N_pad]  padded, pre-cast W.T
    bias2d:       [1, N_pad]      padded f32 bias
    returns:      [B, n_cla]
    """
    B, E = f.shape
    E_pad, N_pad = weight_t_pad.shape
    assert E_pad >= E and E_pad % _LANE == 0 and N_pad % _LANE == 0
    assert bias2d.shape == (1, N_pad)

    out_dtype = out_dtype or f.dtype
    compute_dtype = weight_t_pad.dtype
    in_bytes = jnp.dtype(compute_dtype).itemsize
    out_bytes = jnp.dtype(out_dtype).itemsize
    f32_out = jnp.dtype(out_dtype) == jnp.dtype(jnp.float32)

    # Per-call work only touches the small activation operand.
    B_pad = _round_up(B, _SUBLANE)
    if f.dtype != compute_dtype:
        f = f.astype(compute_dtype)
    if (B_pad, E_pad) != (B, E):
        f = jnp.pad(f, ((0, B_pad - B), (0, E_pad - E)))

    # --- tile selection -----------------------------------------------------------
    # Weight reuse first: one M tile covering the whole padded batch when it fits, so
    # each weight tile is streamed from HBM exactly once.
    bm_max = 1024 if in_bytes <= 2 else 512
    bm = bm or _pick_tile(B_pad, bm_max, _SUBLANE)
    bn = bn or _pick_tile(N_pad, 1024, _LANE)
    bk = bk or _pick_tile(E_pad, 2048, _LANE)

    def _footprint(bm_, bn_, bk_):
        multi = (E_pad // bk_) > 1
        use_scratch = multi and not f32_out
        fp = 2 * bm_ * bk_ * in_bytes                      # activation (double buffered)
        fp += max(weight_buffers, 2) * bk_ * bn_ * in_bytes  # weight tiles
        fp += 2 * bn_ * 4                                   # bias row
        fp += 2 * bm_ * bn_ * out_bytes                     # output tiles
        if use_scratch:
            fp += bm_ * bn_ * 4                             # f32 accumulator
        return fp

    # Shrink tiles (K first, then N, then M) until they fit the VMEM budget.
    while _footprint(bm, bn, bk) > _VMEM_BUDGET:
        if bk > _LANE:
            bk = _pick_tile(E_pad, bk // 2, _LANE)
        elif bn > _LANE:
            bn = _pick_tile(N_pad, bn // 2, _LANE)
        elif bm > _SUBLANE:
            bm = _pick_tile(B_pad, bm // 2, _SUBLANE)
        else:
            break

    # Megacore (v7x, 2 TCs): get >=2 parallel grid steps from the N axis (duplicates
    # only the small activation reads); never shrink bm onto the MXU-utilization cliff.
    if (B_pad // bm) * (N_pad // bn) < 2:
        if bn >= 2 * _LANE:
            bn = _pick_tile(N_pad, bn // 2, _LANE)
        elif bm >= 256:
            bm = _pick_tile(B_pad, bm // 2, _SUBLANE)

    grid_m, grid_n, grid_k = B_pad // bm, N_pad // bn, E_pad // bk
    vmem_limit = int(min(_VMEM_BUDGET, max(2 * _footprint(bm, bn, bk), 16 << 20)))

    w_spec_kwargs = {}
    if weight_buffers > 2:
        # Deeper buffering on the dominant (weight) stream; sweep 2 vs 3 per chip.
        w_spec_kwargs["pipeline_mode"] = pl.Buffered(weight_buffers)

    if grid_k == 1:
        grid = (grid_m, grid_n)
        in_specs = [
            pl.BlockSpec((bm, bk), lambda i, j: (i, 0)),                    # activations
            pl.BlockSpec((bk, bn), lambda i, j: (0, j), **w_spec_kwargs),   # weights
            pl.BlockSpec((1, bn), lambda i, j: (0, j)),                     # bias
        ]
        out_spec = pl.BlockSpec((bm, bn), lambda i, j: (i, j))
        kernel = _linear_single_k_kernel
        scratch = []
        dims = ("parallel", "parallel")
    else:
        grid = (grid_m, grid_n, grid_k)
        in_specs = [
            pl.BlockSpec((bm, bk), lambda i, j, k: (i, k)),
            pl.BlockSpec((bk, bn), lambda i, j, k: (k, j), **w_spec_kwargs),
            pl.BlockSpec((1, bn), lambda i, j, k: (0, j)),
        ]
        out_spec = pl.BlockSpec((bm, bn), lambda i, j, k: (i, j))
        dims = ("parallel", "parallel", "arbitrary")
        if f32_out:
            kernel = _linear_multi_k_f32out_kernel
            scratch = []
        else:
            kernel = _linear_multi_k_kernel
            scratch = [pltpu.VMEM((bm, bn), jnp.float32)]

    out_padded = pl.pallas_call(
        kernel,
        out_shape=jax.ShapeDtypeStruct((B_pad, N_pad), out_dtype),
        grid_spec=pltpu.PrefetchScalarGridSpec(
            num_scalar_prefetch=0,
            grid=grid,
            in_specs=in_specs,
            out_specs=out_spec,
            scratch_shapes=scratch,
        ),
        compiler_params=pltpu.CompilerParams(
            dimension_semantics=dims,
            vmem_limit_bytes=vmem_limit,
        ),
    )(f, weight_t_pad, bias2d)

    return out_padded[:B, :n_cla]


class DotScratchPallas:
    """Pallas-TPU equivalent of the PyTorch DotScratch module: forward(f) = fc(f).

    Weight padding / transposition / bf16 cast happen once at construction, not per
    forward, so each forward streams the weight from HBM exactly once.
    """

    def __init__(self, n_cla, emb_size=2048, *, compute_dtype=jnp.bfloat16,
                 out_dtype=jnp.float32, key=None):
        key = key if key is not None else jax.random.PRNGKey(0)
        k_w, k_b = jax.random.split(key)
        bound = 1.0 / (emb_size ** 0.5)  # nn.Linear default uniform init
        self.weight = jax.random.uniform(k_w, (n_cla, emb_size), jnp.float32, -bound, bound)
        self.bias = jax.random.uniform(k_b, (n_cla,), jnp.float32, -bound, bound)
        self.n_cla = n_cla
        self.out_dtype = out_dtype
        self.w_t_pad, self.bias2d = prepare_dot_scratch_params(
            self.weight, self.bias, compute_dtype=compute_dtype)

    def __call__(self, f, **tile_kwargs):
        return dot_scratch_forward(f, self.w_t_pad, self.bias2d, self.n_cla,
                                   out_dtype=self.out_dtype, **tile_kwargs)


if __name__ == "__main__":
    key = jax.random.PRNGKey(0)

    # --- Test 1: module-shaped demo, default bf16 compute, single-K-step path. ------
    batch, emb_size, n_cla = 16, 32, 16
    k_mod, k_f = jax.random.split(key)
    model = DotScratchPallas(n_cla, emb_size, key=k_mod)  # bf16 weights, f32 output
    f = jax.random.normal(k_f, (batch, emb_size), jnp.float32)

    logits = model(f)
    jax.block_until_ready(logits)
    ref = f @ model.weight.T + model.bias
    assert logits.shape == (batch, n_cla)
    assert jnp.allclose(logits, ref, atol=5e-2, rtol=5e-2), "bf16 single-K path mismatch"

    # --- Test 2: f32 compute, multi-K path (accumulates directly into the output). --
    batch2, emb2, n_cla2 = 32, 384, 40
    k_w2, k_b2, k_f2 = jax.random.split(jax.random.PRNGKey(1), 3)
    bound = 1.0 / (emb2 ** 0.5)
    w2 = jax.random.uniform(k_w2, (n_cla2, emb2), jnp.float32, -bound, bound)
    b2 = jax.random.uniform(k_b2, (n_cla2,), jnp.float32, -bound, bound)
    f2 = jax.random.normal(k_f2, (batch2, emb2), jnp.float32)

    w2_t_pad, b2_2d = prepare_dot_scratch_params(w2, b2, compute_dtype=jnp.float32)
    logits2 = dot_scratch_forward(f2, w2_t_pad, b2_2d, n_cla2, bk=128,
                                  out_dtype=jnp.float32)
    jax.block_until_ready(logits2)
    ref2 = f2 @ w2.T + b2
    assert logits2.shape == (batch2, n_cla2)
    assert jnp.allclose(logits2, ref2, atol=1e-5, rtol=1e-5), "f32 multi-K path mismatch"

    # --- Test 3: bf16 compute, multi-K path, bf16 output (scratch accumulator). -----
    logits3 = dot_scratch_forward(f2, w2_t_pad.astype(jnp.bfloat16), b2_2d, n_cla2,
                                  bk=128, out_dtype=jnp.bfloat16)
    jax.block_until_ready(logits3)
    assert logits3.shape == (batch2, n_cla2)
    assert jnp.allclose(logits3.astype(jnp.float32), ref2, atol=6e-2, rtol=6e-2), \
        "bf16 multi-K scratch path mismatch"

    print("KERNEL_OK")
</pallas_src>

<mosaic_0001>
module attributes {stable_mosaic.version = 11 : i64} {
  func.func @_linear_single_k_kernel(%arg0: i32, %arg1: i32, %arg2: memref<16x128xbf16, #tpu.memory_space<vmem>>, %arg3: memref<128x128xbf16, #tpu.memory_space<vmem>>, %arg4: memref<1x128xf32, #tpu.memory_space<vmem>>, %arg5: memref<16x128xf32, #tpu.memory_space<vmem>>) attributes {dimension_semantics = [#tpu.dimension_semantics<parallel>, #tpu.dimension_semantics<parallel>], iteration_bounds = array<i64: 1, 1>, scalar_prefetch = 0 : i64, scratch_operands = 0 : i64, tpu.core_type = #tpu.core_type<tc>, window_params = [{transform_indices = @transform_0, window_bounds = array<i64: 16, 128>}, {transform_indices = @transform_1, window_bounds = array<i64: 128, 128>}, {transform_indices = @transform_2, window_bounds = array<i64: 1, 128>}, {transform_indices = @transform_3, window_bounds = array<i64: 16, 128>}]} {
    %c0 = arith.constant 0 : index
    %c0_0 = arith.constant 0 : index
    %0 = vector.load %arg2[%c0, %c0_0] : memref<16x128xbf16, #tpu.memory_space<vmem>>, vector<16x128xbf16>
    %c0_1 = arith.constant 0 : index
    %c0_2 = arith.constant 0 : index
    %1 = vector.load %arg3[%c0_1, %c0_2] : memref<128x128xbf16, #tpu.memory_space<vmem>>, vector<128x128xbf16>
    %cst = arith.constant dense<0.000000e+00> : vector<16x128xf32>
    %2 = tpu.matmul %0, %1, %cst {dimension_numbers = #tpu.dot_dimension_numbers<[1], [0], [0], [1], [0, 0, 1, 1], [], []>} : vector<16x128xbf16>, vector<128x128xbf16>, vector<16x128xf32> -> vector<16x128xf32>
    %c0_3 = arith.constant 0 : index
    %c0_4 = arith.constant 0 : index
    %3 = vector.load %arg4[%c0_3, %c0_4] : memref<1x128xf32, #tpu.memory_space<vmem>>, vector<1x128xf32>
    %4 = vector.broadcast %3 : vector<1x128xf32> to vector<16x128xf32>
    %5 = arith.addf %2, %4 : vector<16x128xf32>
    %c0_5 = arith.constant 0 : index
    %c0_6 = arith.constant 0 : index
    %6 = vector.load %arg5[%c0_5, %c0_6] : memref<16x128xf32, #tpu.memory_space<vmem>>, vector<16x128xf32>
    tpu.vector_store %arg5[%c0_5, %c0_6], %5 {strides = array<i32>} : memref<16x128xf32, #tpu.memory_space<vmem>>, vector<16x128xf32>,
    return
  }
  func.func @transform_0(%arg0: i32, %arg1: i32) -> (i32, i32) {
    %c0_i32 = arith.constant 0 : i32
    %c0_i32_0 = arith.constant 0 : i32
    return %arg0, %c0_i32 : i32, i32
  }
  func.func @transform_1(%arg0: i32, %arg1: i32) -> (i32, i32) {
    %c0_i32 = arith.constant 0 : i32
    %c0_i32_0 = arith.constant 0 : i32
    return %c0_i32, %arg1 : i32, i32
  }
  func.func @transform_2(%arg0: i32, %arg1: i32) -> (i32, i32) {
    %c0_i32 = arith.constant 0 : i32
    %c0_i32_0 = arith.constant 0 : i32
    return %c0_i32, %arg1 : i32, i32
  }
  func.func @transform_3(%arg0: i32, %arg1: i32) -> (i32, i32) {
    %c0_i32 = arith.constant 0 : i32
    return %arg0, %arg1 : i32, i32
  }
}

</mosaic_0001>

<bundles_post_ra>
// kernel: tpu_custom_call.1
= control target key start
LH: loop header
LB: loop body
LE: loop exit
PB: predicated region body
PF: predicated region fallthrough
CT: control target
= control target key end

     0   :  { %8 = vsyncpa [#allocation3], 0  ;;  %s348_s0 = inlined_call_operand.hbm [shape: bf16[16,128], index: 0, kind: input, shape index: {}]   ;;  %s349_s1 = inlined_call_operand.hbm [shape: bf16[128,128], index: 1, kind: input, shape index: {}]   ;;  %s350_s2 = inlined_call_operand.vmem [shape: f32[1,128], index: 2, kind: input, shape index: {}]   ;;  %s351_s3 = inlined_call_operand.hbm [shape: f32[16,128], index: 3, kind: output, shape index: {}]  }
   0x1   :  { %9 = vsyncpa [#allocation6], 0 }
   0x2   :  { %10 = vsyncpa [#allocation4], 0  ;;  %s307_s12 = smov [#allocation2]  }
   0x3   :  { %s16_s13 = sshll.u32 %s307_s12, 4  ;;  %s17_s13 = int_to_ptr.vmem [resolvable:$true] %s16_s13 }
   0x4   :  { %s249_s14 = scalar_lea.vmem %s17_s13, 128  ;;  %p254_p1 = scmp.lt.s32.totalorder %s17_s13, %s17_s13 }
   0x5   :  { %p250_p0 = scmp.ne.s32.totalorder %s17_s13, %s249_s14  ;;  %p255_p2 = scmp.lt.s32.totalorder %s249_s14, %s249_s14 }
   0x7   :  { %p256_p3 = por %p255_p2, %p254_p1 }
   0x9   :  { %p257_p4 = pnand %p256_p3, %p250_p0 }
   0xb   :  { %260 = shalt.err (!%p257_p4)
}
   0xc   :  { %s308_s15 = smov 64   ;;  %s309_s16 = smov 4  }
   0xd   :  { %22 = dma.hbm_to_vmem [thread:$0]  %s348_s0, 128, %s17_s13, [#allocation3], %s308_s15, %s308_s15, %s309_s16  }
   0xe   :  { %s310_s19 = smov [#allocation5]  }
   0xf   :  { %s28_s20 = sshll.u32 %s310_s19, 4  ;;  %s29_s20 = int_to_ptr.vmem [resolvable:$true] %s28_s20 }
  0x10   :  { %s269_s21 = scalar_lea.vmem %s29_s20, 1024  ;;  %p274_p6 = scmp.lt.s32.totalorder %s29_s20, %s29_s20 }
  0x11   :  { %p270_p5 = scmp.ne.s32.totalorder %s29_s20, %s269_s21  ;;  %p275_p7 = scmp.lt.s32.totalorder %s269_s21, %s269_s21 }
  0x13   :  { %p276_p8 = por %p275_p7, %p274_p6 }
  0x15   :  { %p277_p9 = pnand %p276_p8, %p270_p5 }
  0x17   :  { %280 = shalt.err (!%p277_p9)
}
  0x18   :  { %34 = dma.hbm_to_vmem [thread:$0]  %s349_s1, 1024, %s29_s20, [#allocation6], %s308_s15, %s308_s15, %s309_s16  }
  0x19   :  { %301 = dma.done.wait [#allocation3], 128  }
  0x1a   :  { %302 = vsyncadd [#allocation3], 4294967168 }
  0x1b   :  { %303 = dma.done.wait [#allocation6], 1024  }
  0x1c   :  { %304 = vsyncadd [#allocation6], 4294966272  ;;  %v311_v0 = vmov 0.0   ;;  %vm312_vm0 = vmmov 0   ;;  %v232_v1 = vld [vmem:[#allocation5 + $0x38] sm:$0xff]   ;;  %v233_v2 = vld [vmem:[#allocation5 + $0x30] sm:$0xff]  }
  0x1d   :  { %203 = vmatprep.subr.bf16.mxu0 %v311_v0  ;;  %219 = vmatprep.mubr.msk.bf16.mxu0 %vm312_vm0, %v311_v0  ;;  %v234_v3 = vld [vmem:[#allocation5 + $0x28] sm:$0xff]   ;;  %v235_v4 = vld [vmem:[#allocation5 + $0x20] sm:$0xff]   ;;  %v236_v5 = vld [vmem:[#allocation5 + $0x18] sm:$0xff]   ;;  %s313_s24 = smov [#allocation7]  }
  0x1e   :  { %204 = vmatpush3.bf16.msra.mxu0 %v232_v1  ;;  %v237_v6 = vld [vmem:[#allocation5 + $0x10] sm:$0xff]   ;;  %v238_v7 = vld [vmem:[#allocation5 + $0x8] sm:$0xff]   ;;  %v239_v8 = vld [vmem:[#allocation5] sm:$0xff]   ;;  %s171_s25 = sshll.u32 %s313_s24, 4  ;;  %s172_s25 = int_to_ptr.vmem [resolvable:$true] %s171_s25 }
  0x1f   :  { %205 = vmatprep.subr.bf16.mxu0 %v311_v0  ;;  %v240_v9 = vld [vmem:[#allocation2] sm:$0xff]   ;;  %s281_s26 = scalar_lea.vmem %s172_s25, 256  ;;  %p286_p11 = scmp.lt.s32.totalorder %s172_s25, %s172_s25 }
  0x20   :  { %v184_v10 = vld [vmem:[%s350_s2] ss:$0 sm:$0xff]  ;;  %p282_p10 = scmp.ne.s32.totalorder %s172_s25, %s281_s26  ;;  %p287_p12 = scmp.lt.s32.totalorder %s281_s26, %s281_s26 }
  0x22   :  { %206 = vmatpush3.bf16.msra.mxu0 %v233_v2  ;;  %p288_p13 = por %p287_p12, %p286_p11 }
  0x23   :  { %207 = vmatprep.subr.bf16.mxu0 %v311_v0 }
  0x24   :  { %p289_p0 = pnand %p288_p13, %p282_p10 }
  0x26   :  { %208 = vmatpush3.bf16.msra.mxu0 %v234_v3 }
  0x27   :  { %209 = vmatprep.subr.bf16.mxu0 %v311_v0 }
  0x2a   :  { %210 = vmatpush3.bf16.msra.mxu0 %v235_v4 }
  0x2b   :  { %211 = vmatprep.subr.bf16.mxu0 %v311_v0 }
  0x2e   :  { %212 = vmatpush3.bf16.msra.mxu0 %v236_v5 }
  0x2f   :  { %213 = vmatprep.subr.bf16.mxu0 %v311_v0 }
  0x32   :  { %214 = vmatpush3.bf16.msra.mxu0 %v237_v6 }
  0x33   :  { %215 = vmatprep.subr.bf16.mxu0 %v311_v0 }
  0x36   :  { %216 = vmatpush3.bf16.msra.mxu0 %v238_v7 }
  0x37   :  { %217 = vmatprep.subr.bf16.mxu0 %v311_v0 }
  0x3a   :  { %218 = vmatpush3.bf16.msra.mxu0 %v239_v8 }
  0x3d   :  { %220 = vmatmul.mubr.bf16.vlgmr.msra.gmra.mxu0 %v240_v9 }
  0xfd   :  { %v157_v11 = vpop.f32.mrf.mxu0 }
  0xfe   :  { %v158_v12 = vadd.f32 %v184_v10, %v157_v11 }
  0xff   :  { %v221_v13 = vpop.f32.mrf.mxu0 }
 0x100   :  { %164 = vst [vmem:[#allocation7] sm:$0xff] %v158_v12 }
 0x101   :  { %v160_v14 = vpop.f32.mrf.mxu0 }
 0x102   :  { %v161_v15 = vadd.f32 %v184_v10, %v160_v14 }
 0x103   :  { %v222_v16 = vpop.f32.mrf.mxu0 }
 0x104   :  { %165 = vst [vmem:[#allocation7 + $0x8] sm:$0xff] %v161_v15 }
 0x105   :  { %292 = shalt.err (!%p289_p0)
}
 0x106   :  { %s314_s27 = smov 128   ;;  %s315_s2 = smov 8  }
 0x107   :  { %177 = dma.vmem_to_hbm [thread:$0]  %s172_s25, 256, %s351_s3, [#allocation4], %s314_s27, %s314_s27, %s315_s2  }
 0x108   :  { %305 = dma.done.wait [#allocation4], 256  }
 0x109   :  { %306 = vsyncadd [#allocation4], 4294967040 }
 0x10a   :  { %181 = vsyncpa [#allocation3], 1 }
 0x10b   :  { %182 = vsyncpa [#allocation6], 1 }
 0x10c   :  { %183 = vsyncpa [#allocation4], 1 }

</bundles_post_ra>
